<compile_context>
chip_gen: v5e
topology: v5e:2x2
jax: 0.10.0
libtpu: 0.0.40
codegen_flags: <defaults>
</compile_context>

<pallas_src>
import functools
import math

import jax
import jax.numpy as jnp
from jax import lax
from jax.experimental import pallas as pl
from jax.experimental.pallas import tpu as pltpu

_HALF_LOG_2PI = float(0.5 * math.log(2.0 * math.pi))
_LANE = 128
_SUBLANE = 8
_BLOCK_BYTES = 4 * 1024 * 1024   # per-input VMEM block budget (dtype-aware)
_MAX_TILE_COLS = 4096            # bounds the unrolled lane-fold loop


def _poisson_match_kernel(w_ref, x_ref, t_ref, o_ref, sum_ref, cnt_ref,
                          *, n_cols, tile_cols):
    # w_ref:   (1,) f32 scalar weight (scalar-prefetch, SMEM)
    # x_ref:   (TB, TN) input tile        t_ref: (TB, TN) target tile
    # o_ref:   (TB, 1)  per-row nanmean output (resident across column tiles)
    # sum_ref: (TB, 128) lane-wide running sum
    # cnt_ref: (TB, 128) lane-wide running non-NaN count
    j = pl.program_id(1)

    @pl.when(j == 0)
    def _():
        sum_ref[...] = jnp.zeros_like(sum_ref)
        cnt_ref[...] = jnp.zeros_like(cnt_ref)

    x = x_ref[...].astype(jnp.float32)   # upcast in-register (inputs may be bf16)
    t = t_ref[...].astype(jnp.float32)

    # torch.clamp(x, min=0.01); NaNs propagate through maximum, same as torch.
    H = jnp.maximum(x, jnp.float32(0.01))
    O = jnp.maximum(t, jnp.float32(0.01))

    # Merged-log formulation (two logs per element):
    #   loss = H - (O+0.5)*log(H) + [O>1]*((O+0.5)*log(O) - O + 0.5*log(2*pi))
    # Exact algebra vs. the PyTorch formula except dropping the +1e-8 inside
    # log(H + eps); with H >= 0.01 the difference is <= ~1e-6 relative.
    c = O + jnp.float32(0.5)
    loss = H - c * jnp.log(H)
    stirling = c * jnp.log(O) - O + jnp.float32(_HALF_LOG_2PI)
    loss = loss + jnp.where(O > jnp.float32(1.0), stirling, jnp.float32(0.0))

    # nanmean bookkeeping; also mask out-of-range lanes of the ragged last
    # column tile (inputs are NOT padded in HBM, so the OOB part of the edge
    # block holds unspecified data).
    invalid = jnp.isnan(loss)
    if n_cols % tile_cols != 0:
        col = j * tile_cols + lax.broadcasted_iota(jnp.int32, loss.shape, 1)
        invalid = invalid | (col >= n_cols)

    vals = jnp.where(invalid, jnp.float32(0.0), loss)
    ones = jnp.where(invalid, jnp.float32(0.0), jnp.float32(1.0))

    # Fold TN lanes into the 128-lane accumulators with pure VPU adds; the
    # cross-lane (XLU) reduce happens once per row tile in the finalize.
    s = sum_ref[...]
    n = cnt_ref[...]
    for k in range(tile_cols // _LANE):
        sl = slice(k * _LANE, (k + 1) * _LANE)
        s = s + vals[:, sl]
        n = n + ones[:, sl]
    sum_ref[...] = s
    cnt_ref[...] = n

    @pl.when(j == pl.num_programs(1) - 1)
    def _():
        total = jnp.sum(sum_ref[...], axis=-1, keepdims=True)
        count = jnp.sum(cnt_ref[...], axis=-1, keepdims=True)
        # Weight applied once per row (hoisted out of the per-element path).
        # 0/0 -> NaN matches torch.nanmean on all-NaN rows.
        o_ref[...] = (w_ref[0] * total) / count


def _round_up(x, m):
    return ((x + m - 1) // m) * m


def _round_down(x, m):
    return (x // m) * m


def poisson_match_loss(inp, target, weight=1.0, *, tile_rows=None, tile_cols=None):
    """Pallas implementation of PoissonMatchLoss.forward with axis=-1 (2-D)."""
    assert inp.shape == target.shape and inp.ndim == 2
    B, N = inp.shape
    dtype_bytes = jnp.dtype(inp.dtype).itemsize
    max_elems = max(_BLOCK_BYTES // dtype_bytes, _SUBLANE * _LANE)

    b8 = _round_up(B, _SUBLANE)
    n128 = _round_up(N, _LANE)

    if tile_cols is None:
        # Lane tile: cover all columns when possible (no over-padding — edge
        # blocks are masked in-kernel), else the biggest lane tile that still
        # leaves room for >= 8 rows within the VMEM block budget.
        tile_cols = min(n128, _MAX_TILE_COLS,
                        max(_LANE, _round_down(max_elems // _SUBLANE, _LANE)))
    if tile_rows is None:
        # Keep >= 2 row tiles when B permits so the "parallel" row axis can
        # shard across v7x's two TensorCores; otherwise fill the block budget.
        tb_cap = b8 if b8 < 2 * _SUBLANE else _round_up(b8 // 2, _SUBLANE)
        tile_rows = min(tb_cap,
                        max(_SUBLANE, _round_down(max_elems // tile_cols, _SUBLANE)))
    TB, TN = int(tile_rows), int(tile_cols)
    assert TB % _SUBLANE == 0 and TN % _LANE == 0

    grid = (pl.cdiv(B, TB), pl.cdiv(N, TN))
    out_rows = grid[0] * TB            # tiny f32 output; pad rows, slice after
    w = jnp.asarray([weight], dtype=jnp.float32)

    kernel = functools.partial(_poisson_match_kernel, n_cols=N, tile_cols=TN)

    out = pl.pallas_call(
        kernel,
        out_shape=jax.ShapeDtypeStruct((out_rows, 1), jnp.float32),
        grid_spec=pltpu.PrefetchScalarGridSpec(
            num_scalar_prefetch=1,            # weight -> SMEM
            grid=grid,
            in_specs=[
                pl.BlockSpec((TB, TN), lambda i, j, w_sref: (i, j)),  # input
                pl.BlockSpec((TB, TN), lambda i, j, w_sref: (i, j)),  # target
            ],
            out_specs=pl.BlockSpec((TB, 1), lambda i, j, w_sref: (i, 0)),
            scratch_shapes=[
                pltpu.VMEM((TB, _LANE), jnp.float32),   # running sum   (lane-wide)
                pltpu.VMEM((TB, _LANE), jnp.float32),   # running count (lane-wide)
            ],
        ),
        compiler_params=pltpu.CompilerParams(
            dimension_semantics=("parallel", "arbitrary"),
            vmem_limit_bytes=48 * 1024 * 1024,
        ),
    )(w, inp, target)
    return out[:B, 0]


def _reference(inp, target, weight=1.0):
    """Pure-JAX reference mirroring the PyTorch module (original formulation)."""
    inp = inp.astype(jnp.float32)
    target = target.astype(jnp.float32)
    H = jnp.maximum(inp, 0.01)
    O = jnp.maximum(target, 0.01)
    nll = H - O * jnp.log(H + 1e-8)
    stirling = O * jnp.log(O) - O + 0.5 * jnp.log(2.0 * jnp.pi * O)
    nll = nll + jnp.where(O > 1.0, stirling, 0.0)
    loss = nll - 0.5 * jnp.log(H)
    return jnp.nanmean(weight * loss, axis=-1)


if __name__ == "__main__":
    key = jax.random.PRNGKey(0)
    ks = jax.random.split(key, 8)

    # --- Test 1: aligned shape, NaN in input AND target, all-NaN row, weight --
    B, N = 8, 128
    inp = jnp.abs(jax.random.normal(ks[0], (B, N), jnp.float32)) * 3.0
    tgt = jnp.abs(jax.random.normal(ks[1], (B, N), jnp.float32)) * 3.0
    inp = inp.at[1, 5].set(jnp.nan)          # NaN in input
    tgt = tgt.at[2, 17].set(jnp.nan)         # NaN in target
    inp = inp.at[3, :].set(jnp.nan)          # all-NaN row -> nanmean = NaN
    out = jax.block_until_ready(poisson_match_loss(inp, tgt, weight=2.5))
    ref = _reference(inp, tgt, weight=2.5)
    assert out.shape == (B,)
    assert bool(jnp.allclose(out, ref, rtol=1e-5, atol=1e-5, equal_nan=True)), (out, ref)

    # --- Test 2: unaligned shape (no wrapper padding; in-kernel masking) -------
    B2, N2 = 5, 200
    inp2 = jnp.abs(jax.random.normal(ks[2], (B2, N2), jnp.float32)) * 3.0
    tgt2 = jnp.abs(jax.random.normal(ks[3], (B2, N2), jnp.float32)) * 3.0
    tgt2 = tgt2.at[0, 3].set(jnp.nan)
    out2 = jax.block_until_ready(poisson_match_loss(inp2, tgt2, weight=1.0))
    ref2 = _reference(inp2, tgt2, weight=1.0)
    assert out2.shape == (B2,)
    assert bool(jnp.allclose(out2, ref2, rtol=1e-5, atol=1e-5)), (out2, ref2)

    # --- Test 3: multi-tile grid (row + column accumulator path) + bf16 --------
    B3, N3 = 16, 512
    inp3 = (jnp.abs(jax.random.normal(ks[4], (B3, N3), jnp.float32)) * 3.0).astype(jnp.bfloat16)
    tgt3 = (jnp.abs(jax.random.normal(ks[5], (B3, N3), jnp.float32)) * 3.0).astype(jnp.bfloat16)
    out3 = jax.block_until_ready(
        poisson_match_loss(inp3, tgt3, weight=1.0, tile_rows=8, tile_cols=256))
    ref3 = _reference(inp3, tgt3, weight=1.0)   # reference upcasts bf16 -> f32 too
    assert out3.shape == (B3,)
    assert bool(jnp.allclose(out3, ref3, rtol=1e-5, atol=1e-5)), (out3, ref3)

    # --- Test 4: multi-tile grid with ragged last column tile + NaNs -----------
    B4, N4 = 16, 300
    inp4 = jnp.abs(jax.random.normal(ks[6], (B4, N4), jnp.float32)) * 3.0
    tgt4 = jnp.abs(jax.random.normal(ks[7], (B4, N4), jnp.float32)) * 3.0
    inp4 = inp4.at[7, 299].set(jnp.nan)
    out4 = jax.block_until_ready(
        poisson_match_loss(inp4, tgt4, weight=0.5, tile_rows=8, tile_cols=128))
    ref4 = _reference(inp4, tgt4, weight=0.5)
    assert out4.shape == (B4,)
    assert bool(jnp.allclose(out4, ref4, rtol=1e-5, atol=1e-5)), (out4, ref4)

    print("KERNEL_OK")
</pallas_src>

<mosaic_0001>
module attributes {stable_mosaic.version = 11 : i64} {
  func.func @_poisson_match_kernel(%arg0: i32, %arg1: i32, %arg2: memref<1xf32, #tpu.memory_space<smem>>, %arg3: memref<8x128xf32, #tpu.memory_space<vmem>>, %arg4: memref<8x128xf32, #tpu.memory_space<vmem>>, %arg5: memref<8x1xf32, #tpu.memory_space<vmem>>, %arg6: memref<8x128xf32, #tpu.memory_space<vmem>>, %arg7: memref<8x128xf32, #tpu.memory_space<vmem>>) attributes {dimension_semantics = [#tpu.dimension_semantics<parallel>, #tpu.dimension_semantics<arbitrary>], iteration_bounds = array<i64: 1, 1>, scalar_prefetch = 1 : i64, scratch_operands = 2 : i64, tpu.core_type = #tpu.core_type<tc>, window_params = [{transform_indices = @transform_0, window_bounds = array<i64: 8, 128>}, {transform_indices = @transform_1, window_bounds = array<i64: 8, 128>}, {transform_indices = @transform_2, window_bounds = array<i64: 8, 1>}]} {
    %c0_i32 = arith.constant 0 : i32
    %0 = arith.cmpi eq, %arg1, %c0_i32 : i32
    %1 = arith.extui %0 : i1 to i32
    %c0_i32_0 = arith.constant 0 : i32
    %2 = arith.cmpi ne, %1, %c0_i32_0 : i32
    scf.if %2 {
      %cst_22 = arith.constant 0.000000e+00 : f32
      %39 = vector.broadcast %cst_22 : f32 to vector<8x128xf32>
      %c0_23 = arith.constant 0 : index
      %c0_24 = arith.constant 0 : index
      %40 = vector.load %arg6[%c0_23, %c0_24] : memref<8x128xf32, #tpu.memory_space<vmem>>, vector<8x128xf32>
      tpu.vector_store %arg6[%c0_23, %c0_24], %39 {strides = array<i32>} : memref<8x128xf32, #tpu.memory_space<vmem>>, vector<8x128xf32>,
      %cst_25 = arith.constant 0.000000e+00 : f32
      %41 = vector.broadcast %cst_25 : f32 to vector<8x128xf32>
      %c0_26 = arith.constant 0 : index
      %c0_27 = arith.constant 0 : index
      %42 = vector.load %arg7[%c0_26, %c0_27] : memref<8x128xf32, #tpu.memory_space<vmem>>, vector<8x128xf32>
      tpu.vector_store %arg7[%c0_26, %c0_27], %41 {strides = array<i32>} : memref<8x128xf32, #tpu.memory_space<vmem>>, vector<8x128xf32>,
    } else {
    }
    %c0 = arith.constant 0 : index
    %c0_1 = arith.constant 0 : index
    %3 = vector.load %arg3[%c0, %c0_1] : memref<8x128xf32, #tpu.memory_space<vmem>>, vector<8x128xf32>
    %c0_2 = arith.constant 0 : index
    %c0_3 = arith.constant 0 : index
    %4 = vector.load %arg4[%c0_2, %c0_3] : memref<8x128xf32, #tpu.memory_space<vmem>>, vector<8x128xf32>
    %cst = arith.constant 0.00999999977 : f32
    %5 = vector.broadcast %cst : f32 to vector<8x128xf32>
    %6 = arith.maximumf %3, %5 : vector<8x128xf32>
    %cst_4 = arith.constant 0.00999999977 : f32
    %7 = vector.broadcast %cst_4 : f32 to vector<8x128xf32>
    %8 = arith.maximumf %4, %7 : vector<8x128xf32>
    %cst_5 = arith.constant 5.000000e-01 : f32
    %9 = vector.broadcast %cst_5 : f32 to vector<8x128xf32>
    %10 = arith.addf %8, %9 : vector<8x128xf32>
    %11 = math.log %6 : vector<8x128xf32>
    %12 = arith.mulf %10, %11 : vector<8x128xf32>
    %13 = arith.subf %6, %12 : vector<8x128xf32>
    %14 = math.log %8 : vector<8x128xf32>
    %15 = arith.mulf %10, %14 : vector<8x128xf32>
    %16 = arith.subf %15, %8 : vector<8x128xf32>
    %cst_6 = arith.constant 0.918938517 : f32
    %17 = vector.broadcast %cst_6 : f32 to vector<8x128xf32>
    %18 = arith.addf %16, %17 : vector<8x128xf32>
    %cst_7 = arith.constant 1.000000e+00 : f32
    %19 = vector.broadcast %cst_7 : f32 to vector<8x128xf32>
    %20 = arith.cmpf ogt, %8, %19 : vector<8x128xf32>
    %cst_8 = arith.constant 0.000000e+00 : f32
    %21 = vector.broadcast %cst_8 : f32 to vector<8x128xf32>
    %22 = arith.select %20, %18, %21 : vector<8x128xi1>, vector<8x128xf32>
    %23 = arith.addf %13, %22 : vector<8x128xf32>
    %24 = arith.cmpf one, %23, %23 : vector<8x128xf32>
    %cst_9 = arith.constant 0.000000e+00 : f32
    %25 = vector.broadcast %cst_9 : f32 to vector<8x128xf32>
    %26 = arith.select %24, %25, %23 : vector<8x128xi1>, vector<8x128xf32>
    %cst_10 = arith.constant 0.000000e+00 : f32
    %cst_11 = arith.constant 1.000000e+00 : f32
    %27 = vector.broadcast %cst_10 : f32 to vector<8x128xf32>
    %28 = vector.broadcast %cst_11 : f32 to vector<8x128xf32>
    %29 = arith.select %24, %27, %28 : vector<8x128xi1>, vector<8x128xf32>
    %c0_12 = arith.constant 0 : index
    %c0_13 = arith.constant 0 : index
    %30 = vector.load %arg6[%c0_12, %c0_13] : memref<8x128xf32, #tpu.memory_space<vmem>>, vector<8x128xf32>
    %c0_14 = arith.constant 0 : index
    %c0_15 = arith.constant 0 : index
    %31 = vector.load %arg7[%c0_14, %c0_15] : memref<8x128xf32, #tpu.memory_space<vmem>>, vector<8x128xf32>
    %32 = arith.addf %30, %26 : vector<8x128xf32>
    %33 = arith.addf %31, %29 : vector<8x128xf32>
    %c0_16 = arith.constant 0 : index
    %c0_17 = arith.constant 0 : index
    %34 = vector.load %arg6[%c0_16, %c0_17] : memref<8x128xf32, #tpu.memory_space<vmem>>, vector<8x128xf32>
    tpu.vector_store %arg6[%c0_16, %c0_17], %32 {strides = array<i32>} : memref<8x128xf32, #tpu.memory_space<vmem>>, vector<8x128xf32>,
    %c0_18 = arith.constant 0 : index
    %c0_19 = arith.constant 0 : index
    %35 = vector.load %arg7[%c0_18, %c0_19] : memref<8x128xf32, #tpu.memory_space<vmem>>, vector<8x128xf32>
    tpu.vector_store %arg7[%c0_18, %c0_19], %33 {strides = array<i32>} : memref<8x128xf32, #tpu.memory_space<vmem>>, vector<8x128xf32>,
    %c0_i32_20 = arith.constant 0 : i32
    %36 = arith.cmpi eq, %arg1, %c0_i32_20 : i32
    %37 = arith.extui %36 : i1 to i32
    %c0_i32_21 = arith.constant 0 : i32
    %38 = arith.cmpi ne, %37, %c0_i32_21 : i32
    scf.if %38 {
      %c0_22 = arith.constant 0 : index
      %c0_23 = arith.constant 0 : index
      %39 = vector.load %arg6[%c0_22, %c0_23] : memref<8x128xf32, #tpu.memory_space<vmem>>, vector<8x128xf32>
      %cst_24 = arith.constant dense<0.000000e+00> : vector<8xf32>
      %40 = vector.multi_reduction <add>, %39, %cst_24 [1] : vector<8x128xf32> to vector<8xf32>
      %41 = vector.shape_cast %40 : vector<8xf32> to vector<8x1xf32>
      %c0_25 = arith.constant 0 : index
      %c0_26 = arith.constant 0 : index
      %42 = vector.load %arg7[%c0_25, %c0_26] : memref<8x128xf32, #tpu.memory_space<vmem>>, vector<8x128xf32>
      %cst_27 = arith.constant dense<0.000000e+00> : vector<8xf32>
      %43 = vector.multi_reduction <add>, %42, %cst_27 [1] : vector<8x128xf32> to vector<8xf32>
      %44 = vector.shape_cast %43 : vector<8xf32> to vector<8x1xf32>
      %c0_28 = arith.constant 0 : index
      %45 = memref.load %arg2[%c0_28] : memref<1xf32, #tpu.memory_space<smem>>
      %46 = vector.broadcast %45 : f32 to vector<8x1xf32>
      %47 = arith.mulf %46, %41 : vector<8x1xf32>
      %48 = arith.divf %47, %44 : vector<8x1xf32>
      %c0_29 = arith.constant 0 : index
      %c0_30 = arith.constant 0 : index
      %49 = vector.load %arg5[%c0_29, %c0_30] : memref<8x1xf32, #tpu.memory_space<vmem>>, vector<8x1xf32>
      tpu.vector_store %arg5[%c0_29, %c0_30], %48 {strides = array<i32>} : memref<8x1xf32, #tpu.memory_space<vmem>>, vector<8x1xf32>,
    } else {
    }
    return
  }
  func.func @transform_0(%arg0: i32, %arg1: i32, %arg2: memref<1xf32, #tpu.memory_space<smem>>) -> (i32, i32) {
    %c0_i32 = arith.constant 0 : i32
    return %arg0, %arg1 : i32, i32
  }
  func.func @transform_1(%arg0: i32, %arg1: i32, %arg2: memref<1xf32, #tpu.memory_space<smem>>) -> (i32, i32) {
    %c0_i32 = arith.constant 0 : i32
    return %arg0, %arg1 : i32, i32
  }
  func.func @transform_2(%arg0: i32, %arg1: i32, %arg2: memref<1xf32, #tpu.memory_space<smem>>) -> (i32, i32) {
    %c0_i32 = arith.constant 0 : i32
    %c0_i32_0 = arith.constant 0 : i32
    return %arg0, %c0_i32 : i32, i32
  }
}

</mosaic_0001>

<bundles_post_ra>
// kernel: tpu_custom_call.1
= control target key start
LH: loop header
LB: loop body
LE: loop exit
PB: predicated region body
PF: predicated region fallthrough
CT: control target
= control target key end

     0   :  { %9 = vsyncpa [#allocation7], 0  ;;  %s204_s0 = inlined_call_operand.<no memory space> [shape: f32[1], index: 0, kind: input, shape index: {}]   ;;  %s205_s1 = inlined_call_operand.hbm [shape: f32[8,128], index: 1, kind: input, shape index: {}]   ;;  %s206_s2 = inlined_call_operand.hbm [shape: f32[8,128], index: 2, kind: input, shape index: {}]   ;;  %s207_s3 = inlined_call_operand.vmem [shape: f32[8,1], index: 3, kind: output, shape index: {}]  }
   0x1   :  { %s16_s14 = sshll.u32 %s205_s1, 4  ;;  %s17_s14 = int_to_ptr.hbm [resolvable:$true] %s16_s14 }
   0x2   :  { %10 = vsyncpa [#allocation9], 0  ;;  %s169_s15 = smov [#allocation6]   ;;  %s27_s19 = sshll.u32 %s206_s2, 4  ;;  %s28_s19 = int_to_ptr.hbm [resolvable:$true] %s27_s19 }
   0x3   :  { %s18_s16 = sshll.u32 %s169_s15, 4  ;;  %s170_s20 = smov [#allocation8]   ;;  %s19_s16 = int_to_ptr.vmem [resolvable:$true] %s18_s16 }
   0x4   :  { %21 = dma.hbm_to_vmem [thread:$0]  %s17_s14, 128, %s19_s16, [#allocation7]  }
   0x5   :  { %s29_s21 = sshll.u32 %s170_s20, 4  ;;  %s30_s21 = int_to_ptr.vmem [resolvable:$true] %s29_s21 }
   0x6   :  { %32 = dma.hbm_to_vmem [thread:$0]  %s28_s19, 128, %s30_s21, [#allocation9]  }
   0x7   :  { %165 = dma.done.wait [#allocation7], 128  }
   0x8   :  { %166 = vsyncadd [#allocation7], 4294967168 }
   0x9   :  { %167 = dma.done.wait [#allocation9], 128  }
   0xa   :  { %168 = vsyncadd [#allocation9], 4294967168  ;;  %v47_v0 = vld [vmem:[#allocation6] sm:$0xff]  ;;  %v48_v1 = vld [vmem:[#allocation8] sm:$0xff]  ;;  %v171_v16 = vmov 1.0   ;;  %v83_v23 = vstv %s204_s0  ;;  %vm100_vm6 = vcmask 7168  }
   0xb   :  { %v49_v2 = vmax.f32 %v47_v0, 0.01  ;;  %v50_v3 = vmax.f32 %v48_v1, 0.01 }
   0xd   :  { %111 = vlog2.f32 %v49_v2  ;;  %v51_v5 = vadd.f32 0.5, %v50_v3  ;;  %vm61_vm0 = vcmp.gt.f32.partialorder %v50_v3, 1.0 }
   0xe   :  { %113 = vlog2.f32 %v50_v3 }
  0x13   :  { %v112_v4 = vpop.eup %111 }
  0x14   :  { %v114_v6 = vpop.eup %113  ;;  %v53_v7 = vmul.f32 0.6931472, %v112_v4 }
  0x15   :  { %v57_v8 = vmul.f32 0.6931472, %v114_v6 }
  0x16   :  { %v54_v9 = vmul.f32 %v53_v7, %v51_v5 }
  0x17   :  { %v58_v10 = vmul.f32 %v57_v8, %v51_v5 }
  0x18   :  { %v55_v12 = vsub.f32 %v49_v2, %v54_v9 }
  0x19   :  { %v59_v11 = vsub.f32 %v58_v10, %v50_v3 }
  0x1b   :  { %v60_v13 = vadd.f32 0.9189385, %v59_v11 }
  0x1d   :  { %v62_v14 = vsel %vm61_vm0, %v60_v13, 0.0 }
  0x1e   :  { %v63_v15 = vadd.f32 %v62_v14, %v55_v12 }
  0x20   :  { %vm64_vm1 = vcmp.ne.f32.partialorder %v63_v15, %v63_v15 }
  0x21   :  { %v66_v17 = vsel %vm64_vm1, 0.0, %v171_v16  ;;  %v65_v18 = vsel %vm64_vm1, 0.0, %v63_v15 }
  0x22   :  { %80 = vadd.xlane.f32.xlu0 %v66_v17 }
  0x2a   :  { %77 = vadd.xlane.f32.xlu0 %v65_v18 }
  0x95   :  { %v81_v19 = vpop.xlane.xlu0 %80 }
  0x96   :  { %115 = vrcp.f32 %v81_v19  ;;  %v96_v24 = vand.u32 2147483648, %v81_v19  ;;  %v94_v27 = vand.u32 2147483647, %v81_v19  ;;  %vm90_vm3 = vweird.f32 %v81_v19 }
  0x98   :  { %v97_v30 = vor.u32 1.1754944e-38, %v96_v24  ;;  %vm95_vm5 = vcmp.eq.f32.partialorder %v94_v27, 8.507059e+37 }
  0x9c   :  { %v116_v20 = vpop.eup %115 }
  0x9d   :  { %v86_v21 = vmul.f32 %v116_v20, %v81_v19  ;;  %v78_v25 = vpop.xlane.xlu0 %77  ;;  %vm91_vm2 = vweird.f32 %v116_v20 }
  0x9e   :  { %v84_v29 = vmul.f32 %v83_v23, %v78_v25  ;;  %vm92_vm4 = vmor %vm90_vm3, %vm91_vm2 }
  0x9f   :  { %v87_v22 = vsub.f32 1.0, %v86_v21 }
  0xa1   :  { %v88_v26 = vmul.f32 %v116_v20, %v87_v22 }
  0xa3   :  { %v89_v28 = vadd.f32 %v116_v20, %v88_v26 }
  0xa5   :  { %v93_v31 = vsel %vm92_vm4, %v116_v20, %v89_v28 }
  0xa6   :  { %v98_v32 = vsel %vm95_vm5, %v97_v30, %v93_v31 }
  0xa7   :  { %v99_v33 = vmul.f32 %v98_v32, %v84_v29 }
  0xa9   :  { %101 = vst.msk [vmem:[%s207_s3] sm:$0xff] %vm100_vm6, %v99_v33 }
  0xaa   :  { %106 = vsyncpa [#allocation7], 1 }
  0xab   :  { %107 = vsyncpa [#allocation9], 1 }

</bundles_post_ra>
